<compile_context>
chip_gen: v5e
topology: v5e:2x2
jax: 0.10.0
libtpu: 0.0.40
codegen_flags: <defaults>
</compile_context>

<pallas_src>
import numpy as np
import jax
import jax.numpy as jnp
from jax.experimental import pallas as pl
from jax.experimental.pallas import tpu as pltpu

ACT_SCALE = np.float32(np.sqrt(2.0))   # matches np.sqrt(2).astype(np.float32)
NEG_SLOPE = 0.2
EPS = 1e-8


def modulate_kernel(w9_ref, ws_ref, wmodT_ref, bmod_ref, wf_ref):
    """One-shot: style Linear + filter modulation + demodulation.

    w9_ref   : (9, Cout, Cin) conv weight, tap index = ky*3 + kx
    ws_ref   : (1, ws_feats)
    wmodT_ref: (ws_feats, Cin)
    bmod_ref : (1, Cin)
    wf_ref   : (9, Cout, Cin) demodulated filter (bf16 output)
    """
    style = jnp.dot(ws_ref[...], wmodT_ref[...],
                    preferred_element_type=jnp.float32) + bmod_ref[...]   # (1, Cin)
    wm = w9_ref[...] * style.reshape(1, 1, -1)                            # (9, Cout, Cin)
    ssum = jnp.sum(jnp.sum(wm * wm, axis=2, keepdims=True),
                   axis=0, keepdims=True)                                 # (1, Cout, 1)
    wf_ref[...] = (wm * jax.lax.rsqrt(ssum + EPS)).astype(wf_ref.dtype)


def conv_kernel(wf_hbm, x0_ref, x1_ref, x2_ref, nz_ref, b_ref, o_ref,
                wf_vmem, dma_sem):
    """Hot path: one output row (Cout, W) per grid step.

    wf_hbm : (9, Cout, Cin) bf16, left in HBM (memory_space=ANY); copied once
             per row-sweep into the single-buffered VMEM scratch wf_vmem.
    x{0,1,2}_ref: (1, 1, Cin, W+2) bf16, padded activation rows r, r+1, r+2.
    nz_ref : (1, 1, W)  noise row r
    b_ref  : (Cout, 1)  act bias
    o_ref  : (1, 1, Cout, W) f32 output row
    """
    # Load the stationary filter exactly once per row sweep (row index 0).
    # The row axis is "arbitrary", so on every core this runs before any use.
    @pl.when(pl.program_id(1) == 0)
    def _load_filter():
        cp = pltpu.make_async_copy(wf_hbm, wf_vmem, dma_sem)
        cp.start()
        cp.wait()

    _, _, c_out, w = o_ref.shape
    c_in = x1_ref.shape[2]

    rows = (x0_ref[...].reshape(c_in, w + 2),   # ky = 0
            x1_ref[...].reshape(c_in, w + 2),   # ky = 1
            x2_ref[...].reshape(c_in, w + 2))   # ky = 2

    # 9 accumulating tap matmuls: bf16 operands, f32 accumulation.
    acc = jnp.zeros((c_out, w), jnp.float32)
    for ky in range(3):
        row = rows[ky]
        for kx in range(3):
            acc = acc + jnp.dot(wf_vmem[3 * ky + kx], row[:, kx:kx + w],
                                preferred_element_type=jnp.float32)

    # f32 epilogue: noise + bias + LeakyReLU * sqrt(2)
    y = acc + nz_ref[...].reshape(1, w) + b_ref[...]
    y = jnp.maximum(y, NEG_SLOPE * y) * ACT_SCALE
    o_ref[...] = y.reshape(o_ref.shape).astype(o_ref.dtype)


def conv1_layer(x, ws, wmod, bmod, conv_weight, act_bias, noise):
    """x: (N, Cin, H, W) NCHW; ws: (1, ws_feats).  Returns NCHW output."""
    N, Cin, H, W = x.shape
    Cout = conv_weight.shape[0]
    Wp = W + 2

    # ---- one-shot modulation / demodulation (off the hot path) --------------
    w9 = jnp.transpose(conv_weight, (2, 3, 0, 1)).reshape(9, Cout, Cin)
    wmodT = jnp.transpose(wmod, (1, 0))            # (ws_feats, Cin)
    bmod_row = bmod.reshape(1, Cin)

    vmem = pl.BlockSpec(memory_space=pltpu.MemorySpace.VMEM)
    wf = pl.pallas_call(
        modulate_kernel,
        out_shape=jax.ShapeDtypeStruct((9, Cout, Cin), jnp.bfloat16),
        in_specs=[vmem] * 4,
        out_specs=vmem,
    )(w9, ws, wmodT, bmod_row)

    # ---- activation layout: pad once, (Cin, W+2) on the (sublane, lane) tile
    # (N, Cin, H, W) -> (N, H+2, Cin, W+2), bf16 operands for the MXU.
    # TODO(synk): fuse pad/relayout into the kernel via manual halo DMAs so the
    # activation stream becomes a strict single HBM read.
    xp = jnp.transpose(jnp.pad(x, ((0, 0), (0, 0), (1, 1), (1, 1))),
                       (0, 2, 1, 3)).astype(jnp.bfloat16)

    # Module noise is a (1,1,H,W) parameter (broadcast over batch).
    noise_rows = noise.reshape(H, 1, W)
    bias_col = act_bias.reshape(Cout, 1)

    flops = 2 * 9 * Cout * Cin * N * H * W
    bytes_accessed = (3 * xp.size * xp.dtype.itemsize      # 3x read of padded activation
                      + N * H * Cout * W * 4               # f32 output
                      + N * wf.size * wf.dtype.itemsize)   # filter copy per image

    out = pl.pallas_call(
        conv_kernel,
        out_shape=jax.ShapeDtypeStruct((N, H, Cout, W), jnp.float32),
        grid=(N, H),
        in_specs=[
            pl.BlockSpec(memory_space=pl.ANY),                             # filter (HBM, copied once)
            pl.BlockSpec((1, 1, Cin, Wp), lambda n, r: (n, r, 0, 0)),      # padded row r   (ky=0)
            pl.BlockSpec((1, 1, Cin, Wp), lambda n, r: (n, r + 1, 0, 0)),  # padded row r+1 (ky=1)
            pl.BlockSpec((1, 1, Cin, Wp), lambda n, r: (n, r + 2, 0, 0)),  # padded row r+2 (ky=2)
            pl.BlockSpec((1, 1, W), lambda n, r: (r, 0, 0)),               # noise row r
            pl.BlockSpec((Cout, 1), lambda n, r: (0, 0)),                  # act bias
        ],
        out_specs=pl.BlockSpec((1, 1, Cout, W), lambda n, r: (n, r, 0, 0)),
        scratch_shapes=[pltpu.VMEM((9, Cout, Cin), jnp.bfloat16),          # single-buffered filter
                        pltpu.SemaphoreType.DMA],
        compiler_params=pltpu.CompilerParams(
            dimension_semantics=("parallel", "arbitrary"),
            vmem_limit_bytes=64 * 1024 * 1024),
        cost_estimate=pl.CostEstimate(flops=flops, transcendentals=0,
                                      bytes_accessed=bytes_accessed),
    )(wf, xp, xp, xp, noise_rows, bias_col)

    # NCHW to match the PyTorch module contract.
    # TODO(synk): fold this transpose into the consumer kernel's index_map when
    # chaining layers, to keep the output channel-major end to end.
    return jnp.transpose(out, (0, 2, 1, 3))


def reference(x, ws, wmod, bmod, conv_weight, act_bias, noise):
    """Pure-JAX (f32) mirror of the PyTorch forward, for correctness checking."""
    style = ws @ wmod.T + bmod                                 # (1, Cin)
    filt = conv_weight * style[0][None, :, None, None]         # (Cout, Cin, 3, 3)
    scale = 1.0 / jnp.sqrt(jnp.sum(filt * filt, axis=(1, 2, 3)) + EPS)
    filt = filt * scale[:, None, None, None]
    y = jax.lax.conv_general_dilated(
        x, filt, window_strides=(1, 1), padding=((1, 1), (1, 1)),
        dimension_numbers=("NCHW", "OIHW", "NCHW"))
    y = y + noise + act_bias
    y = jnp.where(y >= 0, y, NEG_SLOPE * y) * ACT_SCALE
    return y


if __name__ == "__main__":
    N, in_feats, ws_feats, out_feats, im_size = 2, 4, 8, 8, 16

    key = jax.random.PRNGKey(0)
    ks = jax.random.split(key, 7)
    x = jax.random.normal(ks[0], (N, in_feats, im_size, im_size), jnp.float32)
    ws = jax.random.normal(ks[1], (1, ws_feats), jnp.float32)
    # module parameters (deterministic synthetic init, matching __init__ shapes)
    wmod = jax.random.normal(ks[2], (in_feats, ws_feats), jnp.float32) * 0.1
    bmod = jax.random.normal(ks[3], (in_feats,), jnp.float32) * 0.1
    conv_weight = jax.random.normal(ks[4], (out_feats, in_feats, 3, 3), jnp.float32)
    act_bias = jax.random.normal(ks[5], (1, out_feats, 1, 1), jnp.float32)
    noise = jax.random.normal(ks[6], (1, 1, im_size, im_size), jnp.float32)

    y = conv1_layer(x, ws, wmod, bmod, conv_weight, act_bias, noise)
    y = jax.block_until_ready(y)

    y_ref = reference(x, ws, wmod, bmod, conv_weight, act_bias, noise)
    # Tolerance reflects bf16 operand quantization of the matmul inputs
    # (f32 accumulation / epilogue); the reference is full f32.
    np.testing.assert_allclose(np.asarray(y), np.asarray(y_ref),
                               rtol=5e-2, atol=5e-2)
    print("KERNEL_OK")
</pallas_src>

<mosaic_0001>
module attributes {stable_mosaic.version = 11 : i64} {
  func.func @modulate_kernel(%arg0: memref<9x8x4xf32, #tpu.memory_space<vmem>>, %arg1: memref<1x8xf32, #tpu.memory_space<vmem>>, %arg2: memref<8x4xf32, #tpu.memory_space<vmem>>, %arg3: memref<1x4xf32, #tpu.memory_space<vmem>>, %arg4: memref<9x8x4xbf16, #tpu.memory_space<vmem>>) attributes {dimension_semantics = [], scalar_prefetch = 0 : i64, scratch_operands = 0 : i64, tpu.core_type = #tpu.core_type<tc>} {
    %c0 = arith.constant 0 : index
    %c0_0 = arith.constant 0 : index
    %0 = vector.load %arg1[%c0, %c0_0] : memref<1x8xf32, #tpu.memory_space<vmem>>, vector<1x8xf32>
    %c0_1 = arith.constant 0 : index
    %c0_2 = arith.constant 0 : index
    %1 = vector.load %arg2[%c0_1, %c0_2] : memref<8x4xf32, #tpu.memory_space<vmem>>, vector<8x4xf32>
    %cst = arith.constant dense<0.000000e+00> : vector<1x4xf32>
    %2 = tpu.matmul %0, %1, %cst {dimension_numbers = #tpu.dot_dimension_numbers<[1], [0], [0], [1], [0, 0, 1, 1], [], []>} : vector<1x8xf32>, vector<8x4xf32>, vector<1x4xf32> -> vector<1x4xf32>
    %c0_3 = arith.constant 0 : index
    %c0_4 = arith.constant 0 : index
    %3 = vector.load %arg3[%c0_3, %c0_4] : memref<1x4xf32, #tpu.memory_space<vmem>>, vector<1x4xf32>
    %4 = arith.addf %2, %3 : vector<1x4xf32>
    %c0_5 = arith.constant 0 : index
    %c0_6 = arith.constant 0 : index
    %c0_7 = arith.constant 0 : index
    %5 = vector.load %arg0[%c0_5, %c0_6, %c0_7] : memref<9x8x4xf32, #tpu.memory_space<vmem>>, vector<9x8x4xf32>
    %6 = vector.shape_cast %4 : vector<1x4xf32> to vector<1x1x4xf32>
    %7 = vector.broadcast %6 : vector<1x1x4xf32> to vector<9x8x4xf32>
    %8 = arith.mulf %5, %7 : vector<9x8x4xf32>
    %9 = arith.mulf %8, %8 : vector<9x8x4xf32>
    %cst_8 = arith.constant dense<0.000000e+00> : vector<9x8xf32>
    %10 = vector.multi_reduction <add>, %9, %cst_8 [2] : vector<9x8x4xf32> to vector<9x8xf32>
    %11 = vector.shape_cast %10 : vector<9x8xf32> to vector<9x8x1xf32>
    %cst_9 = arith.constant dense<0.000000e+00> : vector<8x1xf32>
    %12 = vector.multi_reduction <add>, %11, %cst_9 [0] : vector<9x8x1xf32> to vector<8x1xf32>
    %13 = vector.shape_cast %12 : vector<8x1xf32> to vector<1x8x1xf32>
    %cst_10 = arith.constant 9.99999993E-9 : f32
    %14 = vector.broadcast %cst_10 : f32 to vector<1x8x1xf32>
    %15 = arith.addf %13, %14 : vector<1x8x1xf32>
    %16 = math.rsqrt %15 : vector<1x8x1xf32>
    %17 = vector.broadcast %16 : vector<1x8x1xf32> to vector<9x8x4xf32>
    %18 = arith.mulf %8, %17 : vector<9x8x4xf32>
    %19 = arith.truncf %18 : vector<9x8x4xf32> to vector<9x8x4xbf16>
    %c0_11 = arith.constant 0 : index
    %c0_12 = arith.constant 0 : index
    %c0_13 = arith.constant 0 : index
    %20 = vector.load %arg4[%c0_11, %c0_12, %c0_13] : memref<9x8x4xbf16, #tpu.memory_space<vmem>>, vector<9x8x4xbf16>
    tpu.vector_store %arg4[%c0_11, %c0_12, %c0_13], %19 {strides = array<i32>} : memref<9x8x4xbf16, #tpu.memory_space<vmem>>, vector<9x8x4xbf16>,
    return
  }
}

</mosaic_0001>

<bundles_post_ra>
// kernel: tpu_custom_call.1
= control target key start
LH: loop header
LB: loop body
LE: loop exit
PB: predicated region body
PF: predicated region fallthrough
CT: control target
= control target key end

     0   :  { %vm20_vm0 = vcmask 64512   ;;  %vm72_vm1 = vcmask 31744   ;;  %vm137_vm5 = vcmask 27648   ;;  %s280_s2 = inlined_call_operand.vmem [shape: f32[8,4], index: 2, kind: input, shape index: {}]   ;;  %s281_s1 = inlined_call_operand.vmem [shape: f32[1,8], index: 1, kind: input, shape index: {}]   ;;  %s282_s3 = inlined_call_operand.vmem [shape: f32[1,4], index: 3, kind: input, shape index: {}]   ;;  %s283_s0 = inlined_call_operand.vmem [shape: f32[9,8,4], index: 0, kind: input, shape index: {}]   ;;  %s284_s4 = inlined_call_operand.vmem [shape: bf16[9,8,4], index: 4, kind: output, shape index: {}]  }
   0x1   :  { %v18_v0 = vld [vmem:[%s280_s2] sm:$0xff]  ;;  %v46_v6 = vld [vmem:[%s283_s0 + $0x10] sm:$0xff]  ;;  %v49_v12 = vld [vmem:[%s283_s0 + $0x28] sm:$0xff] }
   0x2   :  { %v17_v1 = vld [vmem:[%s281_s1] sm:$0x1]  ;;  %39 = vmatpush.msra.mxu0 %v18_v0  ;;  %v47_v13 = vld [vmem:[%s283_s0 + $0x18] sm:$0xff]  ;;  %v45_v17 = vld [vmem:[%s283_s0 + $0x8] sm:$0xff] }
   0x3   :  { %151 = vmatmul.msk.f32.vlgmr.msra.gmra.mxu0 %vm20_vm0, %v17_v1  ;;  %v19_v2 = vld [vmem:[%s282_s3] sm:$0x1]  ;;  %v51_v28 = vld [vmem:[%s283_s0 + $0x38] sm:$0xff]  ;;  %v50_v29 = vld [vmem:[%s283_s0 + $0x30] sm:$0xff] }
   0x4   :  { %v48_v5 = vld [vmem:[%s283_s0 + $0x20] sm:$0xff] }
   0x5   :  { %v44_v7 = vld [vmem:[%s283_s0] sm:$0xff] }
   0x6   :  { %v52_v27 = vld [vmem:[%s283_s0 + $0x40] sm:$0xff] }
  0x80   :  { %v41_v3 = vpop.f32.mrf.mxu0 }
  0x81   :  { %v42_v4 = vadd.f32 %v41_v3, %v19_v2 }
  0x83   :  { %v53_v8 = vperm.slane %v42_v4, 0 }
  0x85   :  { %v197_v9 = vmul.f32 %v53_v8, %v48_v5  ;;  %v199_v10 = vmul.f32 %v53_v8, %v46_v6  ;;  %v201_v11 = vmul.f32 %v53_v8, %v44_v7  ;;  %v218_v18 = vmul.f32 %v53_v8, %v49_v12 }
  0x86   :  { %v57_v22 = vmul.f32 %v53_v8, %v47_v13  ;;  %v55_v23 = vmul.f32 %v53_v8, %v45_v17  ;;  %v62_v32 = vmul.f32 %v53_v8, %v52_v27  ;;  %v61_v33 = vmul.f32 %v53_v8, %v51_v28 }
  0x87   :  { %v67_v14 = vmul.f32 %v197_v9, %v197_v9  ;;  %v65_v15 = vmul.f32 %v199_v10, %v199_v10  ;;  %v63_v16 = vmul.f32 %v201_v11, %v201_v11  ;;  %v68_v24 = vmul.f32 %v218_v18, %v218_v18 }
  0x88   :  { %v66_v25 = vmul.f32 %v57_v22, %v57_v22  ;;  %v64_v26 = vmul.f32 %v55_v23, %v55_v23  ;;  %v60_v35 = vmul.f32 %v53_v8, %v50_v29  ;;  %v71_v36 = vmul.f32 %v62_v32, %v62_v32 }
  0x89   :  { %v85_v19 = vsel %vm72_vm1, %v67_v14, 0.0  ;;  %v79_v20 = vsel %vm72_vm1, %v65_v15, 0.0  ;;  %v73_v21 = vsel %vm72_vm1, %v63_v16, 0.0  ;;  %v88_v30 = vsel %vm72_vm1, %v68_v24, 0.0 }
  0x8a   :  { %86 = vadd.xlane.f32.xlu2 %v85_v19  ;;  %80 = vadd.xlane.f32.xlu1 %v79_v20  ;;  %v82_v31 = vsel %vm72_vm1, %v66_v25, 0.0  ;;  %v76_v34 = vsel %vm72_vm1, %v64_v26, 0.0  ;;  %v70_v37 = vmul.f32 %v61_v33, %v61_v33  ;;  %v69_v38 = vmul.f32 %v60_v35, %v60_v35 }
  0x8b   :  { %74 = vadd.xlane.f32.xlu0 %v73_v21  ;;  %v97_v39 = vsel %vm72_vm1, %v71_v36, 0.0 }
  0x8c   :  { %v94_v40 = vsel %vm72_vm1, %v70_v37, 0.0  ;;  %v91_v41 = vsel %vm72_vm1, %v69_v38, 0.0 }
  0x92   :  { %89 = vadd.xlane.f32.xlu2 %v88_v30  ;;  %83 = vadd.xlane.f32.xlu1 %v82_v31 }
  0x93   :  { %77 = vadd.xlane.f32.xlu0 %v76_v34 }
  0x9a   :  { %98 = vadd.xlane.f32.xlu2 %v97_v39  ;;  %95 = vadd.xlane.f32.xlu1 %v94_v40 }
  0x9b   :  { %92 = vadd.xlane.f32.xlu0 %v91_v41 }
  0xfd   :  { %v81_v42 = vpop.xlane.xlu1 %80  ;;  %v87_v44 = vpop.xlane.xlu2 %86 }
  0xfe   :  { %v75_v43 = vpop.xlane.xlu0 %74 }
 0x105   :  { %v84_v47 = vpop.xlane.xlu1 %83  ;;  %v90_v49 = vpop.xlane.xlu2 %89 }
 0x106   :  { %v78_v45 = vpop.xlane.xlu0 %77 }
 0x107   :  { %v100_v46 = vadd.f32 %v78_v45, %v75_v43 }
 0x109   :  { %v101_v48 = vadd.f32 %v100_v46, %v81_v42 }
 0x10b   :  { %v102_v50 = vadd.f32 %v101_v48, %v84_v47 }
 0x10d   :  { %v103_v51 = vadd.f32 %v102_v50, %v87_v44  ;;  %v96_v55 = vpop.xlane.xlu1 %95  ;;  %v99_v57 = vpop.xlane.xlu2 %98 }
 0x10e   :  { %v93_v53 = vpop.xlane.xlu0 %92 }
 0x10f   :  { %v104_v52 = vadd.f32 %v103_v51, %v90_v49 }
 0x111   :  { %v105_v54 = vadd.f32 %v104_v52, %v93_v53 }
 0x113   :  { %v106_v56 = vadd.f32 %v105_v54, %v96_v55 }
 0x115   :  { %v107_v58 = vadd.f32 %v106_v56, %v99_v57 }
 0x117   :  { %v108_v59 = vadd.f32 1e-08, %v107_v58 }
 0x119   :  { %152 = vrsqrt.f32 %v108_v59  ;;  %vm115_vm3 = vweird.f32 %v108_v59 }
 0x11f   :  { %v153_v60 = vpop.eup %152 }
 0x120   :  { %v110_v61 = vmul.f32 %v153_v60, %v108_v59  ;;  %vm116_vm2 = vweird.f32 %v153_v60 }
 0x121   :  { %vm117_vm4 = vmor %vm115_vm3, %vm116_vm2 }
 0x122   :  { %v111_v62 = vmul.f32 %v153_v60, %v110_v61 }
 0x124   :  { %v112_v63 = vmul.f32 0.5, %v111_v62 }
 0x126   :  { %v113_v0 = vsub.f32 1.5, %v112_v63 }
 0x128   :  { %v114_v1 = vmul.f32 %v153_v60, %v113_v0 }
 0x12a   :  { %v118_v2 = vsel %vm117_vm4, %v153_v60, %v114_v1 }
 0x12b   :  { %v119_v3 = vmul.f32 %v118_v2, %v201_v11  ;;  %v120_v4 = vmul.f32 %v118_v2, %v55_v23  ;;  %v121_v5 = vmul.f32 %v118_v2, %v199_v10  ;;  %v122_v6 = vmul.f32 %v118_v2, %v57_v22 }
 0x12c   :  { %v123_v7 = vmul.f32 %v118_v2, %v197_v9  ;;  %v124_v8 = vmul.f32 %v118_v2, %v218_v18  ;;  %v125_v12 = vmul.f32 %v118_v2, %v60_v35  ;;  %v126_v16 = vmul.f32 %v118_v2, %v61_v33 }
 0x12d   :  { %v128_v13 = vpack.c.bf16 %v119_v3, %v119_v3  ;;  %v129_v14 = vpack.c.bf16 %v120_v4, %v120_v4  ;;  %v130_v15 = vpack.c.bf16 %v121_v5, %v121_v5  ;;  %v131_v17 = vpack.c.bf16 %v122_v6, %v122_v6 }
 0x12e   :  { %v127_v19 = vmul.f32 %v118_v2, %v62_v32  ;;  %v132_v20 = vpack.c.bf16 %v123_v7, %v123_v7  ;;  %v133_v10 = vpack.c.bf16 %v124_v8, %v124_v8  ;;  %v134_v9 = vpack.c.bf16 %v125_v12, %v125_v12 }
 0x12f   :  { %138 = vst.msk [vmem:[%s284_s4] sm:$0xf] %vm137_vm5, %v128_v13  ;;  %v135_v11 = vpack.c.bf16 %v126_v16, %v126_v16 }
 0x130   :  { %139 = vst.msk [vmem:[%s284_s4 + $0x4] sm:$0xf] %vm137_vm5, %v129_v14  ;;  %v136_v18 = vpack.c.bf16 %v127_v19, %v127_v19 }
 0x131   :  { %140 = vst.msk [vmem:[%s284_s4 + $0x8] sm:$0xf] %vm137_vm5, %v130_v15 }
 0x132   :  { %141 = vst.msk [vmem:[%s284_s4 + $0xc] sm:$0xf] %vm137_vm5, %v131_v17 }
 0x133   :  { %142 = vst.msk [vmem:[%s284_s4 + $0x10] sm:$0xf] %vm137_vm5, %v132_v20 }
 0x134   :  { %143 = vst.msk [vmem:[%s284_s4 + $0x14] sm:$0xf] %vm137_vm5, %v133_v10 }
 0x135   :  { %144 = vst.msk [vmem:[%s284_s4 + $0x18] sm:$0xf] %vm137_vm5, %v134_v9 }
 0x136   :  { %145 = vst.msk [vmem:[%s284_s4 + $0x1c] sm:$0xf] %vm137_vm5, %v135_v11 }
 0x137   :  { %146 = vst.msk [vmem:[%s284_s4 + $0x20] sm:$0xf] %vm137_vm5, %v136_v18 }

</bundles_post_ra>
